<compile_context>
chip_gen: v6e
topology: v6e:2x2x1
jax: 0.10.0
libtpu: 0.0.40
codegen_flags: <defaults>
</compile_context>

<pallas_src>
import functools

import jax
import jax.numpy as jnp
from jax.experimental import pallas as pl
from jax.experimental.pallas import tpu as pltpu


def _swin_embeddings_kernel(
    patches_ref,   # (TN, K)  bf16 patch tile, K = C*P*P
    weight_ref,    # (K, D)   bf16 projection weight (transposed conv weight)
    bias_ref,      # (1, D)   f32 projection bias
    gamma_ref,     # (1, D)   f32 LayerNorm weight
    beta_ref,      # (1, D)   f32 LayerNorm bias
    mask_ref,      # (TN, 1)  f32 bool_masked_pos (0/1)
    mtok_ref,      # (1, D)   f32 mask token
    out_ref,       # (TN, D)  f32 output tile
    *,
    eps: float,
):
    # Patch projection on the MXU: bf16 x bf16 -> f32 accumulation.
    emb = jnp.dot(patches_ref[...], weight_ref[...],
                  preferred_element_type=jnp.float32)
    emb = emb + bias_ref[...]                                   # (TN, D) f32

    # LayerNorm over embed_dim (f32).
    mean = jnp.mean(emb, axis=-1, keepdims=True)
    centered = emb - mean
    var = jnp.mean(centered * centered, axis=-1, keepdims=True)
    normed = centered * jax.lax.rsqrt(var + eps)
    normed = normed * gamma_ref[...] + beta_ref[...]

    # Mask-token blend: normed + mask * (mask_token - normed)
    mask = mask_ref[...]                                        # (TN, 1)
    out = normed + mask * (mtok_ref[...] - normed)

    out_ref[...] = out.astype(out_ref.dtype)


def _choose_tile_n(n: int, max_tile: int = 256) -> int:
    """Pick a patch-tile size: <= max_tile, multiple of 8 (or the full extent)."""
    if n <= max_tile:
        return n
    for tn in range(max_tile, 7, -8):       # multiples of 8, descending
        if n % tn == 0:
            return tn
    return max_tile                          # ragged last tile handled by Pallas


def swin_embeddings_forward(
    pixel_values,        # (B, C, H, W)  NCHW
    conv_weight,         # (D, C, P, P)  PyTorch Conv2d weight layout
    conv_bias,           # (D,)
    ln_gamma,            # (D,)
    ln_beta,             # (D,)
    mask_token,          # (1, 1, D)
    bool_masked_pos,     # (B, num_patches) bool, or None
    *,
    patch_size: int,
    layer_norm_eps: float = 1e-5,
    max_tile_n: int = 256,
):
    B, C, H, W = pixel_values.shape
    D = conv_weight.shape[0]
    P = patch_size
    gh, gw = H // P, W // P
    N = gh * gw
    K = C * P * P
    TN = _choose_tile_n(N, max_tile_n)
    NT = pl.cdiv(N, TN)

    # --- glue: extract non-overlapping patches (Conv2d with stride == kernel).
    # Cast to bf16 *before* the transpose so the HBM intermediate is half size.
    x = pixel_values.astype(jnp.bfloat16).reshape(B, C, gh, P, gw, P)
    x = jnp.transpose(x, (0, 2, 4, 1, 3, 5))                    # (B, gh, gw, C, P, P)
    patches = x.reshape(B, N, K)                                # bf16

    w_mat = conv_weight.reshape(D, K).T.astype(jnp.bfloat16)    # (K, D) bf16
    bias2d = conv_bias.reshape(1, D).astype(jnp.float32)
    gamma2d = ln_gamma.reshape(1, D).astype(jnp.float32)
    beta2d = ln_beta.reshape(1, D).astype(jnp.float32)
    mtok2d = mask_token.reshape(1, D).astype(jnp.float32)

    # HF Swin only blends when bool_masked_pos is given; a zeros mask recovers it.
    if bool_masked_pos is None:
        mask = jnp.zeros((B, N, 1), jnp.float32)
    else:
        mask = bool_masked_pos.astype(jnp.float32).reshape(B, N, 1)

    kernel = functools.partial(_swin_embeddings_kernel, eps=layer_norm_eps)

    embeddings = pl.pallas_call(
        kernel,
        out_shape=jax.ShapeDtypeStruct((B, N, D), jnp.float32),
        grid_spec=pltpu.PrefetchScalarGridSpec(
            num_scalar_prefetch=0,
            grid=(B, NT),
            in_specs=[
                pl.BlockSpec((None, TN, K), lambda b, t: (b, t, 0)),  # patches tile
                pl.BlockSpec((K, D), lambda b, t: (0, 0)),            # weight (resident)
                pl.BlockSpec((1, D), lambda b, t: (0, 0)),            # bias
                pl.BlockSpec((1, D), lambda b, t: (0, 0)),            # gamma
                pl.BlockSpec((1, D), lambda b, t: (0, 0)),            # beta
                pl.BlockSpec((None, TN, 1), lambda b, t: (b, t, 0)),  # mask tile
                pl.BlockSpec((1, D), lambda b, t: (0, 0)),            # mask token
            ],
            out_specs=pl.BlockSpec((None, TN, D), lambda b, t: (b, t, 0)),
        ),
        compiler_params=pltpu.CompilerParams(
            dimension_semantics=("parallel", "parallel"),
        ),
    )(patches, w_mat, bias2d, gamma2d, beta2d, mask, mtok2d)

    output_dimensions = (gh, gw)
    return embeddings, output_dimensions

    # TODO(synk): absolute position embeddings are skipped (Swin default
    # use_absolute_embeddings=False); enable-able configs would add a (1, N+1, D)
    # parameter that does not broadcast against (B, N, D) here.


def _reference(pixel_values, conv_weight, conv_bias, ln_gamma, ln_beta,
               mask_token, bool_masked_pos, *, patch_size, eps=1e-5):
    """Plain-JAX reference mirroring the PyTorch semantics (bf16-rounded inputs
    to match the kernel's bf16 MXU data path, f32 accumulation)."""
    B, C, H, W = pixel_values.shape
    D = conv_weight.shape[0]
    P = patch_size
    gh, gw = H // P, W // P
    pv = pixel_values.astype(jnp.bfloat16).astype(jnp.float32)
    wt = conv_weight.astype(jnp.bfloat16).astype(jnp.float32)
    out = jax.lax.conv_general_dilated(
        pv, wt, window_strides=(P, P), padding="VALID",
        dimension_numbers=("NCHW", "OIHW", "NCHW"),
    ) + conv_bias.reshape(1, D, 1, 1).astype(jnp.float32)
    emb = out.reshape(B, D, gh * gw).transpose(0, 2, 1)          # (B, N, D)
    mean = emb.mean(-1, keepdims=True)
    var = ((emb - mean) ** 2).mean(-1, keepdims=True)
    emb = (emb - mean) / jnp.sqrt(var + eps) * ln_gamma.astype(jnp.float32) \
        + ln_beta.astype(jnp.float32)
    if bool_masked_pos is not None:
        mask = bool_masked_pos.astype(jnp.float32)[..., None]    # (B, N, 1)
        emb = emb * (1.0 - mask) + mask_token.reshape(1, 1, D) * mask
    return emb, (gh, gw)


def _run_case(B, C, H, W, P, D, with_mask, seed, max_tile_n=256):
    gh, gw = H // P, W // P
    N = gh * gw

    key = jax.random.PRNGKey(seed)
    k_px, k_w, k_b, k_g, k_be, k_m = jax.random.split(key, 6)

    pixel_values = jax.random.normal(k_px, (B, C, H, W), dtype=jnp.float32)
    conv_weight = jax.random.normal(k_w, (D, C, P, P), dtype=jnp.float32) * 0.05
    conv_bias = jax.random.normal(k_b, (D,), dtype=jnp.float32) * 0.05
    ln_gamma = 1.0 + 0.05 * jax.random.normal(k_g, (D,), dtype=jnp.float32)
    ln_beta = 0.05 * jax.random.normal(k_be, (D,), dtype=jnp.float32)
    mask_token = jnp.zeros((1, 1, D), dtype=jnp.float32)  # nn.Parameter(torch.zeros(1,1,D))
    bool_masked_pos = (jax.random.bernoulli(k_m, 0.3, (B, N)) if with_mask else None)

    emb, dims = swin_embeddings_forward(
        pixel_values, conv_weight, conv_bias, ln_gamma, ln_beta,
        mask_token, bool_masked_pos, patch_size=P, max_tile_n=max_tile_n,
    )
    emb = jax.block_until_ready(emb)

    ref, ref_dims = _reference(
        pixel_values, conv_weight, conv_bias, ln_gamma, ln_beta,
        mask_token, bool_masked_pos, patch_size=P,
    )
    assert dims == ref_dims
    assert emb.shape == (B, N, D)
    max_err = float(jnp.max(jnp.abs(emb - ref)))
    assert jnp.allclose(emb, ref, atol=1e-2, rtol=1e-2), max_err


if __name__ == "__main__":
    # Small Swin-like config: batch=2, channels=4, image 16x16, patch 4, embed_dim=32.
    _run_case(B=2, C=4, H=16, W=16, P=4, D=32, with_mask=True, seed=0)
    # Slightly larger Swin-T-like config to exercise the N-tiling (N=1024, 4 tiles
    # of 256 per batch element) and the bool_masked_pos=None path.
    _run_case(B=1, C=3, H=128, W=128, P=4, D=96, with_mask=False, seed=1)
    print("KERNEL_OK")
</pallas_src>

<mosaic_0001>
module attributes {stable_mosaic.version = 11 : i64} {
  func.func @_swin_embeddings_kernel(%arg0: i32, %arg1: i32, %arg2: memref<1x16x64xbf16, #tpu.memory_space<vmem>>, %arg3: memref<64x32xbf16, #tpu.memory_space<vmem>>, %arg4: memref<1x32xf32, #tpu.memory_space<vmem>>, %arg5: memref<1x32xf32, #tpu.memory_space<vmem>>, %arg6: memref<1x32xf32, #tpu.memory_space<vmem>>, %arg7: memref<1x16x1xf32, #tpu.memory_space<vmem>>, %arg8: memref<1x32xf32, #tpu.memory_space<vmem>>, %arg9: memref<1x16x32xf32, #tpu.memory_space<vmem>>) attributes {dimension_semantics = [#tpu.dimension_semantics<parallel>, #tpu.dimension_semantics<parallel>], iteration_bounds = array<i64: 2, 1>, scalar_prefetch = 0 : i64, scratch_operands = 0 : i64, tpu.core_type = #tpu.core_type<tc>, window_params = [{transform_indices = @transform_0, window_bounds = array<i64: 1, 16, 64>}, {pipeline_mode = #tpu.pipeline_mode<synchronous>, transform_indices = @transform_1, window_bounds = array<i64: 64, 32>}, {pipeline_mode = #tpu.pipeline_mode<synchronous>, transform_indices = @transform_2, window_bounds = array<i64: 1, 32>}, {pipeline_mode = #tpu.pipeline_mode<synchronous>, transform_indices = @transform_3, window_bounds = array<i64: 1, 32>}, {pipeline_mode = #tpu.pipeline_mode<synchronous>, transform_indices = @transform_4, window_bounds = array<i64: 1, 32>}, {transform_indices = @transform_5, window_bounds = array<i64: 1, 16, 1>}, {pipeline_mode = #tpu.pipeline_mode<synchronous>, transform_indices = @transform_6, window_bounds = array<i64: 1, 32>}, {transform_indices = @transform_7, window_bounds = array<i64: 1, 16, 32>}]} {
    %c0 = arith.constant 0 : index
    %c0_0 = arith.constant 0 : index
    %c0_1 = arith.constant 0 : index
    %0 = vector.load %arg2[%c0, %c0_0, %c0_1] : memref<1x16x64xbf16, #tpu.memory_space<vmem>>, vector<1x16x64xbf16>
    %1 = vector.shape_cast %0 : vector<1x16x64xbf16> to vector<16x64xbf16>
    %c0_2 = arith.constant 0 : index
    %c0_3 = arith.constant 0 : index
    %2 = vector.load %arg3[%c0_2, %c0_3] : memref<64x32xbf16, #tpu.memory_space<vmem>>, vector<64x32xbf16>
    %cst = arith.constant dense<0.000000e+00> : vector<16x32xf32>
    %3 = tpu.matmul %1, %2, %cst {dimension_numbers = #tpu.dot_dimension_numbers<[1], [0], [0], [1], [0, 0, 1, 1], [], []>} : vector<16x64xbf16>, vector<64x32xbf16>, vector<16x32xf32> -> vector<16x32xf32>
    %c0_4 = arith.constant 0 : index
    %c0_5 = arith.constant 0 : index
    %4 = vector.load %arg4[%c0_4, %c0_5] : memref<1x32xf32, #tpu.memory_space<vmem>>, vector<1x32xf32>
    %5 = vector.broadcast %4 : vector<1x32xf32> to vector<16x32xf32>
    %6 = arith.addf %3, %5 : vector<16x32xf32>
    %cst_6 = arith.constant dense<0.000000e+00> : vector<16xf32>
    %7 = vector.multi_reduction <add>, %6, %cst_6 [1] : vector<16x32xf32> to vector<16xf32>
    %8 = vector.shape_cast %7 : vector<16xf32> to vector<16x1xf32>
    %cst_7 = arith.constant 3.200000e+01 : f32
    %9 = vector.broadcast %cst_7 : f32 to vector<16x1xf32>
    %10 = arith.divf %8, %9 : vector<16x1xf32>
    %11 = vector.broadcast %10 : vector<16x1xf32> to vector<16x32xf32>
    %12 = arith.subf %6, %11 : vector<16x32xf32>
    %13 = arith.mulf %12, %12 : vector<16x32xf32>
    %cst_8 = arith.constant dense<0.000000e+00> : vector<16xf32>
    %14 = vector.multi_reduction <add>, %13, %cst_8 [1] : vector<16x32xf32> to vector<16xf32>
    %15 = vector.shape_cast %14 : vector<16xf32> to vector<16x1xf32>
    %cst_9 = arith.constant 3.200000e+01 : f32
    %16 = vector.broadcast %cst_9 : f32 to vector<16x1xf32>
    %17 = arith.divf %15, %16 : vector<16x1xf32>
    %cst_10 = arith.constant 9.99999974E-6 : f32
    %18 = vector.broadcast %cst_10 : f32 to vector<16x1xf32>
    %19 = arith.addf %17, %18 : vector<16x1xf32>
    %20 = math.rsqrt %19 : vector<16x1xf32>
    %21 = vector.broadcast %20 : vector<16x1xf32> to vector<16x32xf32>
    %22 = arith.mulf %12, %21 : vector<16x32xf32>
    %c0_11 = arith.constant 0 : index
    %c0_12 = arith.constant 0 : index
    %23 = vector.load %arg5[%c0_11, %c0_12] : memref<1x32xf32, #tpu.memory_space<vmem>>, vector<1x32xf32>
    %24 = vector.broadcast %23 : vector<1x32xf32> to vector<16x32xf32>
    %25 = arith.mulf %22, %24 : vector<16x32xf32>
    %c0_13 = arith.constant 0 : index
    %c0_14 = arith.constant 0 : index
    %26 = vector.load %arg6[%c0_13, %c0_14] : memref<1x32xf32, #tpu.memory_space<vmem>>, vector<1x32xf32>
    %27 = vector.broadcast %26 : vector<1x32xf32> to vector<16x32xf32>
    %28 = arith.addf %25, %27 : vector<16x32xf32>
    %c0_15 = arith.constant 0 : index
    %c0_16 = arith.constant 0 : index
    %c0_17 = arith.constant 0 : index
    %29 = vector.load %arg7[%c0_15, %c0_16, %c0_17] : memref<1x16x1xf32, #tpu.memory_space<vmem>>, vector<1x16x1xf32>
    %30 = vector.shape_cast %29 : vector<1x16x1xf32> to vector<16x1xf32>
    %c0_18 = arith.constant 0 : index
    %c0_19 = arith.constant 0 : index
    %31 = vector.load %arg8[%c0_18, %c0_19] : memref<1x32xf32, #tpu.memory_space<vmem>>, vector<1x32xf32>
    %32 = vector.broadcast %31 : vector<1x32xf32> to vector<16x32xf32>
    %33 = arith.subf %32, %28 : vector<16x32xf32>
    %34 = vector.broadcast %30 : vector<16x1xf32> to vector<16x32xf32>
    %35 = arith.mulf %34, %33 : vector<16x32xf32>
    %36 = arith.addf %28, %35 : vector<16x32xf32>
    %c0_20 = arith.constant 0 : index
    %c0_21 = arith.constant 0 : index
    %c0_22 = arith.constant 0 : index
    %37 = vector.load %arg9[%c0_20, %c0_21, %c0_22] : memref<1x16x32xf32, #tpu.memory_space<vmem>>, vector<1x16x32xf32>
    %38 = vector.shape_cast %37 : vector<1x16x32xf32> to vector<16x32xf32>
    %39 = vector.shape_cast %36 : vector<16x32xf32> to vector<1x16x32xf32>
    tpu.vector_store %arg9[%c0_20, %c0_21, %c0_22], %39 {strides = array<i32>} : memref<1x16x32xf32, #tpu.memory_space<vmem>>, vector<1x16x32xf32>,
    return
  }
  func.func @transform_0(%arg0: i32, %arg1: i32) -> (i32, i32, i32) {
    %c0_i32 = arith.constant 0 : i32
    %c0_i32_0 = arith.constant 0 : i32
    return %arg0, %arg1, %c0_i32 : i32, i32, i32
  }
  func.func @transform_1(%arg0: i32, %arg1: i32) -> (i32, i32) {
    %c0_i32 = arith.constant 0 : i32
    %c0_i32_0 = arith.constant 0 : i32
    %c0_i32_1 = arith.constant 0 : i32
    return %c0_i32, %c0_i32_0 : i32, i32
  }
  func.func @transform_2(%arg0: i32, %arg1: i32) -> (i32, i32) {
    %c0_i32 = arith.constant 0 : i32
    %c0_i32_0 = arith.constant 0 : i32
    %c0_i32_1 = arith.constant 0 : i32
    return %c0_i32, %c0_i32_0 : i32, i32
  }
  func.func @transform_3(%arg0: i32, %arg1: i32) -> (i32, i32) {
    %c0_i32 = arith.constant 0 : i32
    %c0_i32_0 = arith.constant 0 : i32
    %c0_i32_1 = arith.constant 0 : i32
    return %c0_i32, %c0_i32_0 : i32, i32
  }
  func.func @transform_4(%arg0: i32, %arg1: i32) -> (i32, i32) {
    %c0_i32 = arith.constant 0 : i32
    %c0_i32_0 = arith.constant 0 : i32
    %c0_i32_1 = arith.constant 0 : i32
    return %c0_i32, %c0_i32_0 : i32, i32
  }
  func.func @transform_5(%arg0: i32, %arg1: i32) -> (i32, i32, i32) {
    %c0_i32 = arith.constant 0 : i32
    %c0_i32_0 = arith.constant 0 : i32
    return %arg0, %arg1, %c0_i32 : i32, i32, i32
  }
  func.func @transform_6(%arg0: i32, %arg1: i32) -> (i32, i32) {
    %c0_i32 = arith.constant 0 : i32
    %c0_i32_0 = arith.constant 0 : i32
    %c0_i32_1 = arith.constant 0 : i32
    return %c0_i32, %c0_i32_0 : i32, i32
  }
  func.func @transform_7(%arg0: i32, %arg1: i32) -> (i32, i32, i32) {
    %c0_i32 = arith.constant 0 : i32
    %c0_i32_0 = arith.constant 0 : i32
    return %arg0, %arg1, %c0_i32 : i32, i32, i32
  }
}

</mosaic_0001>

<bundles_post_ra>
// kernel: tpu_custom_call.1
= control target key start
LH: loop header
LB: loop body
LE: loop exit
PB: predicated region body
PF: predicated region fallthrough
CT: control target
= control target key end

     0   :  { %12 = vsyncpa [#allocation3], 0  ;;  %s1013_s0 = inlined_call_operand.vmem [shape: bf16[2,16,64], index: 0, kind: input, shape index: {}]   ;;  %s1014_s1 = inlined_call_operand.vmem [shape: bf16[64,32], index: 1, kind: input, shape index: {}]   ;;  %s1015_s2 = inlined_call_operand.vmem [shape: f32[1,32], index: 2, kind: input, shape index: {}]   ;;  %s1016_s3 = inlined_call_operand.vmem [shape: f32[1,32], index: 3, kind: input, shape index: {}]   ;;  %s1017_s4 = inlined_call_operand.vmem [shape: f32[1,32], index: 4, kind: input, shape index: {}]   ;;  %s1018_s5 = inlined_call_operand.vmem [shape: f32[2,16,1], index: 5, kind: input, shape index: {}]   ;;  %s1019_s6 = inlined_call_operand.vmem [shape: f32[1,32], index: 6, kind: input, shape index: {}]   ;;  %s1020_s7 = inlined_call_operand.hbm [shape: f32[2,16,32], index: 7, kind: output, shape index: {}]  }
   0x1   :  { %14 = vsyncpa [#allocation3 + $0x1], 0  ;;  %s862_s24 = smov 0   ;;  %s864_s25 = smov 0  }
   0x2   :  { %s866_s26 = smov 0   ;;  %s868_s27 = smov 0  }
   0x3   :  { %s870_s28 = smov 0   ;;  %s872_s29 = smov 0  }
   0x4 LB: > { %s622_s30 = sadd.s32 4294967295, %s814_s29   ;;  %s623_s8 = sadd.s32 4294967294, %s814_s29   ;;  %s814_s29 = sphi %s872_s29, %s20_s29   ;;  %s810_s28 = sphi %s870_s28, %s1027_s28   ;;  %s806_s27 = sphi %s868_s27, %s1026_s27   ;;  %s802_s26 = sphi %s866_s26, %s1025_s26   ;;  %s798_s25 = sphi %s864_s25, %s1024_s25   ;;  %s794_s24 = sphi %s862_s24, %s1023_s24  }
   0x5   : > { %s32_s9 = sadd.s32 1, %s810_s28  ;;  %s202_s10 = sadd.s32 1, %s802_s26 }
   0x6   : > { %p34_p0 = scmp.ge.s32.totalorder %s32_s9, 2  ;;  %p212_p1 = scmp.ne.s32.totalorder %s802_s26, %s798_s25 }
   0x7   : > { %p213_p2 = scmp.eq.s32.totalorder %s622_s30, 1  ;;  %p218_p3 = scmp.ne.s32.totalorder %s798_s25, %s794_s24 }
   0x8   : > { %s1029_s9 = smov (%p34_p0, %s32_s9), 0  ;;  %p219_p5 = scmp.eq.s32.totalorder %s623_s8, 1 }
   0x9   : > { %p902_p4 = por %p213_p2, %p212_p1  ;;  %s197_s12 = ssub.s32 %s810_s28, %s1029_s9 }
   0xa   : > { %p626_p6 = scmp.ge.s32.totalorder %s814_s29, 1  ;;  %p200_p7 = scmp.eq.s32.totalorder %s197_s12, 0 }
   0xb   : > { %p909_p8 = por %p219_p5, %p218_p3  ;;  %p278_p9 = scmp.lt.s32.totalorder %s814_s29, 3 }
   0xc   : > { %s915_s14 = scalar_select %p200_p7, %s802_s26, %s202_s10  }
   0xd   : > { %p279_p10 = pnand %p626_p6, %p278_p9 }
   0xe   : > { %p324_p11 = scmp.lt.s32.totalorder (!%p279_p10), %s806_s27, 1  ;;  %s320_s12 = sand.u32 (!%p279_p10), 1, %s798_s25  }
   0xf   : > { %282 = sbr.rel (%p279_p10) target bundleno = 564 (0x234), region = 48  ;;  %s627_s15 = sshll.u32 (!%p279_p10), %s320_s12, 4 }
  0x10   : > { %s322_s16 = scalar_lea.vmem (!%p279_p10), [#allocation2], %s627_s15  ;;  %s649_s18 = sshll.u32 (!%p279_p10), %s806_s27, 8 }
  0x14   : > { %v729_v0 = vld [vmem:[%s1014_s1 + $0x18] sm:$0xff]   ;;  %v816_v1 = vmov 0.0   ;;  %v730_v2 = vld [vmem:[%s1014_s1 + $0x10] sm:$0xff]   ;;  %vm817_vm0 = vmmov 0   ;;  %s925_s19 = scalar_select %p324_p11, %s806_s27, 1  ;;  %v731_v3 = vld [vmem:[%s1014_s1 + $0x8] sm:$0xff]  }
  0x15   : > { %655 = vmatprep.subr.bf16.mxu0 %v816_v1  ;;  %663 = vmatprep.mubr.msk.bf16.mxu0 %vm817_vm0, %v816_v1  ;;  %v732_v4 = vld [vmem:[%s1014_s1] sm:$0xff]   ;;  %vm391_vm1 = vcmask 523264   ;;  %vm436_vm2 = vcmask 261120   ;;  %v818_v15 = vmov 0   ;;  %s819_s27 = smov [#allocation2]  }
  0x16   : > { %656 = vmatpush3.bf16.msra.mxu0 %v729_v0  ;;  %s647_s22 = sshll.u32 %s925_s19, 3  ;;  %v632_v6 = vld [vmem:[%s1015_s2] ss:$0 sm:$0xff]  ;;  %s648_s17 = sshll.u32 %s925_s19, 4  ;;  %727 = vset.pattern.permute.xlu0 %v818_v15 }
  0x17   : > { %657 = vmatprep.subr.bf16.mxu0 %v816_v1  ;;  %s331_s8 = scalar_lea.vmem %s1013_s0, %s647_s22  ;;  %s341_s21 = scalar_lea.vmem %s1018_s5, %s648_s17  ;;  %728 = vset.pattern.permute.xlu1 %v818_v15  ;;  %v639_v35 = vld [vmem:[%s1016_s3] ss:$0 sm:$0xff] }
  0x18   : > { %v733_v5 = vld [vmem:[%s331_s8] sm:$0xff]   ;;  %v483_v27 = vld [vmem:[%s341_s21 + $0x8] sm:$0xff]  ;;  %s525_s17 = sshll.u32 %s322_s16, 4  ;;  %s963_s19 = scalar_lea.hbm %s1020_s7, %s649_s18  ;;  %s965_s17 = int_to_ptr.vmem [resolvable:$true] %s525_s17 }
  0x19   : > { %v482_v16 = vld [vmem:[%s341_s21] sm:$0xff]  ;;  %s968_s22 = scalar_lea.sflag [#allocation3], %s320_s12  ;;  %s738_s23 = scalar_lea.vmem %s965_s17, 256 }
  0x1a   : > { %658 = vmatpush3.bf16.msra.mxu0 %v730_v2  ;;  %v640_v37 = vld [vmem:[%s1017_s4] ss:$0 sm:$0xff]  ;;  %p739_p12 = scmp.ne.s32.totalorder %s965_s17, %s738_s23  ;;  %s742_s30 = sshll.u32 %s819_s27, 4  ;;  %s743_s30 = int_to_ptr.vmem [resolvable:$false] %s742_s30 }
  0x1b   : > { %659 = vmatprep.subr.bf16.mxu0 %v816_v1  ;;  %v641_v40 = vld [vmem:[%s1019_s6] ss:$0 sm:$0xff]  ;;  %s744_s8 = scalar_lea.vmem %s743_s30, 512  ;;  %p745_p1 = scmp.lt.s32.totalorder %s965_s17, %s743_s30 }
  0x1c   : > { %p740_p13 = pnand %p739_p12, %p902_p4  ;;  %p746_p2 = scmp.lt.s32.totalorder %s744_s8, %s738_s23 }
  0x1e   : > { %660 = vmatpush3.bf16.msra.mxu0 %v731_v3  ;;  %p741_p0 = pneg %p740_p13  ;;  %p747_p3 = por %p746_p2, %p745_p1 }
  0x1f   : > { %661 = vmatprep.subr.bf16.mxu0 %v816_v1 }
  0x20   : > { %p748_p5 = pnand %p747_p3, %p741_p0 }
  0x22   : > { %662 = vmatpush3.bf16.msra.mxu0 %v732_v4 }
  0x25   : > { %664 = vmatmul.mubr.msk.bf16.vlgmr.msra.gmra.mxu0 %vm391_vm1, %v733_v5 }
  0xe5   : > { %v429_v7 = vpop.f32.mrf.mxu0 }
  0xe6   : > { %v430_v8 = vadd.f32 %v632_v6, %v429_v7 }
  0xe7   : > { %v665_v9 = vpop.f32.mrf.mxu0 }
  0xe8   : > { %v437_v10 = vsel %vm436_vm2, %v430_v8, 0.0 }
  0xe9   : > { %438 = vadd.xlane.f32.xlu0 %v437_v10  ;;  %v432_v11 = vpop.f32.mrf.mxu0 }
  0xea   : > { %v433_v12 = vadd.f32 %v632_v6, %v432_v11 }
  0xeb   : > { %v666_v13 = vpop.f32.mrf.mxu0 }
  0xec   : > { %v440_v14 = vsel %vm436_vm2, %v433_v12, 0.0 }
  0xed   : > { %441 = vadd.xlane.f32.xlu0 %v440_v14 }
 0x103   : > { %495 = vperm.xlu0 %727, %v482_v16  }
 0x172   : > { %v439_v17 = vpop.xlane.xlu0 %438 }
 0x173   : > { %v444_v18 = vmul.f32 0.03125, %v439_v17 }
 0x175   : > { %v446_v19 = vsub.f32 %v430_v8, %v444_v18 }
 0x176   : > { %v442_v20 = vpop.xlane.xlu0 %441 }
 0x177   : > { %v445_v21 = vmul.f32 0.03125, %v442_v20  ;;  %v448_v22 = vmul.f32 %v446_v19, %v446_v19 }
 0x179   : > { %v447_v23 = vsub.f32 %v433_v12, %v445_v21  ;;  %v450_v24 = vsel %vm436_vm2, %v448_v22, 0.0 }
 0x17a   : > { %451 = vadd.xlane.f32.xlu1 %v450_v24 }
 0x17b   : > { %v449_v25 = vmul.f32 %v447_v23, %v447_v23 }
 0x17d   : > { %v453_v26 = vsel %vm436_vm2, %v449_v25, 0.0 }
 0x17e   : > { %454 = vadd.xlane.f32.xlu1 %v453_v26  ;;  %v496_v43 = vpop.permute.xlu0 %495 }
 0x18f   : > { %500 = vperm.xlu1 %728, %v483_v27  }
 0x203   : > { %v452_v28 = vpop.xlane.xlu1 %451 }
 0x204   : > { %v456_v29 = vmul.f32 0.03125, %v452_v28 }
 0x206   : > { %v458_v30 = vadd.f32 1e-05, %v456_v29 }
 0x207   : > { %v455_v31 = vpop.xlane.xlu1 %454 }
 0x208   : > { %734 = vrsqrt.f32 %v458_v30  ;;  %v457_v32 = vmul.f32 0.03125, %v455_v31 }
 0x20a   : > { %v459_v33 = vadd.f32 1e-05, %v457_v32 }
 0x20b   : > { %v501_v48 = vpop.permute.xlu1 %500 }
 0x20c   : > { %736 = vrsqrt.f32 %v459_v33 }
 0x215   : > { %v735_v34 = vpop.eup %734 }
 0x216   : > { %v462_v36 = vmul.f32 %v735_v34, %v446_v19 }
 0x218   : > { %v471_v38 = vmul.f32 %v639_v35, %v462_v36 }
 0x219   : > { %v737_v39 = vpop.eup %736 }
 0x21a   : > { %v480_v41 = vadd.f32 %v640_v37, %v471_v38  ;;  %v463_v42 = vmul.f32 %v737_v39, %v447_v23 }
 0x21c   : > { %v491_v44 = vsub.f32 %v641_v40, %v480_v41  ;;  %v472_v45 = vmul.f32 %v639_v35, %v463_v42 }
 0x21e   : > { %v503_v46 = vmul.f32 %v496_v43, %v491_v44  ;;  %v481_v47 = vadd.f32 %v640_v37, %v472_v45 }
 0x220   : > { %v505_v49 = vadd.f32 %v503_v46, %v480_v41  ;;  %v492_v50 = vsub.f32 %v641_v40, %v481_v47 }
 0x222   : > { %507 = vst.msk [vmem:[%s322_s16] sm:$0xff] %vm436_vm2, %v505_v49  ;;  %v504_v51 = vmul.f32 %v501_v48, %v492_v50 }
 0x224   : > { %v506_v52 = vadd.f32 %v504_v51, %v481_v47 }
 0x226   : > { %508 = vst.msk [vmem:[%s322_s16 + $0x8] sm:$0xff] %vm436_vm2, %v506_v52 }
 0x227   : > { %751 = shalt.err (!%p748_p5)
}
 0x228   : > { %s752_s10 = scalar_lea.hbm %s963_s19, 256  ;;  %s756_s16 = scalar_lea.hbm %s1020_s7, 512 }
 0x229   : > { %p753_p6 = scmp.ne.s32.totalorder %s963_s19, %s752_s10  ;;  %p757_p10 = scmp.lt.s32.totalorder %s963_s19, %s1020_s7 }
 0x22a   : > { %p758_p11 = scmp.lt.s32.totalorder %s756_s16, %s752_s10 }
 0x22b   : > { %p754_p7 = pnand %p753_p6, %p902_p4 }
 0x22c   : > { %p759_p12 = por %p758_p11, %p757_p10 }
 0x22d   : > { %p755_p9 = pneg %p754_p7 }
 0x22f   : > { %p760_p13 = pnand %p759_p12, %p755_p9 }
 0x231   : > { %763 = shalt.err (!%p760_p13)
}
 0x232   : > { %s820_s21 = smov 128   ;;  %s821_s23 = smov 8  }
 0x233   : > { %667 = dma.vmem_to_hbm [thread:$0]  (%p902_p4), %s965_s17, 256, %s963_s19, %s968_s22, %s820_s21, %s820_s21, %s821_s23  }
 0x234 PF: > { %p673_p0 = scmp.ge.s32.totalorder %s814_s29, 2  ;;  %s540_s27 = sand.u32 1, %s794_s24  }
 0x235   : > { %s541_s30 = scalar_lea.sflag [#allocation3], %s540_s27 }
 0x236   : > { %p670_p1 = pnand %p673_p0, %p909_p8 }
 0x238   : > { %p671_p2 = pneg %p670_p1 }
 0x23a   : > { %789 = dma.done.wait (%p671_p2), %s541_s30, 256  }
 0x23b   : > { %791 = vsyncadd (%p671_p2), %s541_s30, 4294967040  ;;  %s20_s29 = sadd.s32 1, %s814_s29   ;;  %s1023_s24 = smov %s798_s25 }
 0x23c   : > { %p17_p3 = scmp.ge.s32.totalorder %s20_s29, 4   ;;  %s1024_s25 = smov %s802_s26 }
 0x23d   : > { %s1025_s26 = smov %s915_s14  ;;  %s1026_s27 = smov %s810_s28 }
 0x23e   : > { %s1027_s28 = smov %s1029_s9  ;;  %19 = sbr.rel (!%p17_p3) target bundleno = 4 (0x4), region = 86 }
 0x243   :  { %546 = vsyncpa [#allocation3], 1 }
 0x244   :  { %548 = vsyncpa [#allocation3 + $0x1], 1 }

</bundles_post_ra>
